<compile_context>
chip_gen: v5e
topology: v5e:2x2
jax: 0.10.0
libtpu: 0.0.40
codegen_flags: <defaults>
</compile_context>

<pallas_src>
import functools

import jax
import jax.numpy as jnp
from jax.experimental import pallas as pl
from jax.experimental.pallas import tpu as pltpu

HIDDEN = 128
LANES = 128  # lane width of a vreg; output feature dim is padded to a multiple of this


def policy_mlp_kernel(x_ref, w1_ref, b1_ref, w2_ref, b2_ref, w3_ref, b3_ref, o_ref):
    # In-kernel cast of the f32 x tile to bf16 (MXU-native); free on the VPU.
    x = x_ref[...].astype(jnp.bfloat16)
    # Layer 1: Linear + ReLU. bf16 operands, f32 MXU accumulation, f32 VPU elementwise.
    h1 = jnp.dot(x, w1_ref[...], preferred_element_type=jnp.float32)
    h1 = jnp.maximum(h1 + b1_ref[...], 0.0).astype(jnp.bfloat16)
    # Layer 2: Linear + ReLU
    h2 = jnp.dot(h1, w2_ref[...], preferred_element_type=jnp.float32)
    h2 = jnp.maximum(h2 + b2_ref[...], 0.0).astype(jnp.bfloat16)
    # Layer 3: Linear (logits; out-features padded to a lane-dense width)
    out = jnp.dot(h2, w3_ref[...], preferred_element_type=jnp.float32) + b3_ref[...]
    o_ref[...] = out.astype(o_ref.dtype)  # bf16 store -> half the HBM write bytes


def _round_up(n, m):
    return ((n + m - 1) // m) * m


def _pick_batch_tile(B, input_dim, out_pad):
    """Tile heuristic: big tiles to amortize per-step overhead, but keep >=2 grid
    steps for v7x's two TensorCores and stay under v5e's 16 MiB scoped-VMEM default."""
    if B <= 32:
        tile = _round_up(max(B, 16), 16)
    else:
        target = 4096 if B >= 8192 else 2048
        # Ensure the grid has at least 2 steps so "parallel" can shard across TCs.
        tile = min(target, _round_up(pl.cdiv(B, 2), 16))
    # Cap so double-buffered x (f32) + out (bf16) tiles fit comfortably in the
    # smallest default scoped-VMEM budget (v5e: 16 MiB); leave headroom for weights.
    budget = 12 << 20
    def tile_bytes(t):
        return 2 * t * (input_dim * 4 + out_pad * 2)
    while tile > 16 and tile_bytes(tile) > budget:
        tile = _round_up(tile // 2, 16)
    return _round_up(tile, 16)


def policy_network_forward(x, params, *, batch_tile=None):
    """x: [B, input_dim] float32.  params: dict of w1,b1,w2,b2,w3,b3 (f32, [in,out])."""
    x = x.astype(jnp.float32)
    B, input_dim = x.shape
    H = params["w1"].shape[1]
    action_dim = params["w3"].shape[1]

    # --- lane-dense output: pad last-layer out-features up to a multiple of 128 ---
    # TODO(synk): for very small action_dim a narrow (Bp, action_dim) out_spec may win;
    # keep the lane-dense padded output (now bf16) as the measured-safe default.
    out_pad = _round_up(max(action_dim, LANES), LANES)
    w3p = jnp.zeros((H, out_pad), jnp.float32).at[:, :action_dim].set(params["w3"])
    b3p = jnp.zeros((1, out_pad), jnp.float32).at[:, :action_dim].set(params["b3"])

    # --- bf16 MXU operands for the weights; biases stay f32 (added on the f32 acc) ---
    w1 = params["w1"].astype(jnp.bfloat16)
    w2 = params["w2"].astype(jnp.bfloat16)
    w3 = w3p.astype(jnp.bfloat16)
    b1 = params["b1"].astype(jnp.float32)
    b2 = params["b2"].astype(jnp.float32)
    b3 = b3p

    # --- batch tiling (multiple of 16 for bf16 sublane packing of the output) ---
    if batch_tile is None:
        batch_tile = _pick_batch_tile(B, input_dim, out_pad)
    batch_tile = _round_up(max(batch_tile, 16), 16)
    Bp = _round_up(max(B, batch_tile), batch_tile)

    # Pad only the batch remainder; no copy at all when the tile divides B.
    if Bp == B:
        xb = x
    else:
        xb = jnp.zeros((Bp, input_dim), jnp.float32).at[:B].set(x)

    grid = (Bp // batch_tile,)

    flops = 2 * Bp * (input_dim * H + H * H + H * out_pad)
    bytes_accessed = (
        Bp * input_dim * 4                            # x (f32, read once by the kernel)
        + (w1.size + w2.size + w3.size) * 2           # weights (bf16)
        + (b1.size + b2.size + b3.size) * 4           # biases (f32)
        + Bp * out_pad * 2                            # padded bf16 output
    )

    out = pl.pallas_call(
        policy_mlp_kernel,
        out_shape=jax.ShapeDtypeStruct((Bp, out_pad), jnp.bfloat16),
        grid_spec=pltpu.PrefetchScalarGridSpec(
            num_scalar_prefetch=0,
            grid=grid,
            in_specs=[
                pl.BlockSpec((batch_tile, input_dim), lambda i: (i, 0)),  # x tile pipelines
                pl.BlockSpec((input_dim, H), lambda i: (0, 0)),           # w1 resident
                pl.BlockSpec((1, H), lambda i: (0, 0)),                   # b1 resident
                pl.BlockSpec((H, H), lambda i: (0, 0)),                   # w2 resident
                pl.BlockSpec((1, H), lambda i: (0, 0)),                   # b2 resident
                pl.BlockSpec((H, out_pad), lambda i: (0, 0)),             # w3 resident
                pl.BlockSpec((1, out_pad), lambda i: (0, 0)),             # b3 resident
            ],
            out_specs=pl.BlockSpec((batch_tile, out_pad), lambda i: (i, 0)),
        ),
        compiler_params=pltpu.CompilerParams(
            dimension_semantics=("parallel",),
        ),
        cost_estimate=pl.CostEstimate(
            flops=flops, transcendentals=0, bytes_accessed=bytes_accessed
        ),
    )(xb, w1, b1, w2, b2, w3, b3)

    # Strip batch padding / lane padding and return f32 logits (slice + cast fuse).
    return out[:B, :action_dim].astype(jnp.float32)


def init_params(key, input_dim, action_dim, hidden=HIDDEN):
    """Deterministic synthetic parameters (PyTorch-default-like uniform init)."""
    ks = jax.random.split(key, 6)

    def lin(kw, kb, fan_in, fan_out):
        bound = 1.0 / jnp.sqrt(fan_in)
        w = jax.random.uniform(kw, (fan_in, fan_out), jnp.float32, -bound, bound)
        b = jax.random.uniform(kb, (1, fan_out), jnp.float32, -bound, bound)
        return w, b

    w1, b1 = lin(ks[0], ks[1], input_dim, hidden)
    w2, b2 = lin(ks[2], ks[3], hidden, hidden)
    w3, b3 = lin(ks[4], ks[5], hidden, action_dim)
    return dict(w1=w1, b1=b1, w2=w2, b2=b2, w3=w3, b3=b3)


def _reference_forward_f32(x, params):
    h1 = jnp.maximum(x @ params["w1"] + params["b1"], 0.0)
    h2 = jnp.maximum(h1 @ params["w2"] + params["b2"], 0.0)
    return h2 @ params["w3"] + params["b3"]


def _reference_forward_bf16(x, params):
    """Mirrors the kernel's rounding: bf16 matmul operands, f32 accum, bf16 output."""
    def bf16r(a):
        return a.astype(jnp.bfloat16).astype(jnp.float32)
    xr = bf16r(x)
    h1 = bf16r(jnp.maximum(xr @ bf16r(params["w1"]) + params["b1"], 0.0))
    h2 = bf16r(jnp.maximum(h1 @ bf16r(params["w2"]) + params["b2"], 0.0))
    out = h2 @ bf16r(params["w3"]) + params["b3"]
    return bf16r(out)


if __name__ == "__main__":
    key = jax.random.PRNGKey(0)
    k_x, k_x2, k_p = jax.random.split(key, 3)

    input_dim = 32
    action_dim = 8
    params = init_params(k_p, input_dim, action_dim)

    fwd = jax.jit(functools.partial(policy_network_forward))

    # Small batch (single tile, padded batch remainder).
    x = jax.random.normal(k_x, (8, input_dim), dtype=jnp.float32)
    out = fwd(x, params)
    jax.block_until_ready(out)
    assert out.shape == (8, action_dim)
    assert jnp.allclose(out, _reference_forward_bf16(x, params), atol=2e-2, rtol=2e-2)
    assert jnp.allclose(out, _reference_forward_f32(x, params), atol=5e-2, rtol=5e-2)

    # Non-divisible batch (multi-step grid + remainder padding path).
    x2 = jax.random.normal(k_x2, (40, input_dim), dtype=jnp.float32)
    out2 = fwd(x2, params)
    jax.block_until_ready(out2)
    assert out2.shape == (40, action_dim)
    assert jnp.allclose(out2, _reference_forward_bf16(x2, params), atol=2e-2, rtol=2e-2)
    assert jnp.allclose(out2, _reference_forward_f32(x2, params), atol=5e-2, rtol=5e-2)

    print("KERNEL_OK")
</pallas_src>

<mosaic_0001>
module attributes {stable_mosaic.version = 11 : i64} {
  func.func @policy_mlp_kernel(%arg0: i32, %arg1: memref<16x32xf32, #tpu.memory_space<vmem>>, %arg2: memref<32x128xbf16, #tpu.memory_space<vmem>>, %arg3: memref<1x128xf32, #tpu.memory_space<vmem>>, %arg4: memref<128x128xbf16, #tpu.memory_space<vmem>>, %arg5: memref<1x128xf32, #tpu.memory_space<vmem>>, %arg6: memref<128x128xbf16, #tpu.memory_space<vmem>>, %arg7: memref<1x128xf32, #tpu.memory_space<vmem>>, %arg8: memref<16x128xbf16, #tpu.memory_space<vmem>>) attributes {dimension_semantics = [#tpu.dimension_semantics<parallel>], iteration_bounds = array<i64: 1>, scalar_prefetch = 0 : i64, scratch_operands = 0 : i64, tpu.core_type = #tpu.core_type<tc>, window_params = [{transform_indices = @transform_0, window_bounds = array<i64: 16, 32>}, {pipeline_mode = #tpu.pipeline_mode<synchronous>, transform_indices = @transform_1, window_bounds = array<i64: 32, 128>}, {pipeline_mode = #tpu.pipeline_mode<synchronous>, transform_indices = @transform_2, window_bounds = array<i64: 1, 128>}, {pipeline_mode = #tpu.pipeline_mode<synchronous>, transform_indices = @transform_3, window_bounds = array<i64: 128, 128>}, {pipeline_mode = #tpu.pipeline_mode<synchronous>, transform_indices = @transform_4, window_bounds = array<i64: 1, 128>}, {pipeline_mode = #tpu.pipeline_mode<synchronous>, transform_indices = @transform_5, window_bounds = array<i64: 128, 128>}, {pipeline_mode = #tpu.pipeline_mode<synchronous>, transform_indices = @transform_6, window_bounds = array<i64: 1, 128>}, {transform_indices = @transform_7, window_bounds = array<i64: 16, 128>}]} {
    %c0 = arith.constant 0 : index
    %c0_0 = arith.constant 0 : index
    %0 = vector.load %arg1[%c0, %c0_0] : memref<16x32xf32, #tpu.memory_space<vmem>>, vector<16x32xf32>
    %1 = arith.truncf %0 : vector<16x32xf32> to vector<16x32xbf16>
    %c0_1 = arith.constant 0 : index
    %c0_2 = arith.constant 0 : index
    %2 = vector.load %arg2[%c0_1, %c0_2] : memref<32x128xbf16, #tpu.memory_space<vmem>>, vector<32x128xbf16>
    %cst = arith.constant dense<0.000000e+00> : vector<16x128xf32>
    %3 = tpu.matmul %1, %2, %cst {dimension_numbers = #tpu.dot_dimension_numbers<[1], [0], [0], [1], [0, 0, 1, 1], [], []>} : vector<16x32xbf16>, vector<32x128xbf16>, vector<16x128xf32> -> vector<16x128xf32>
    %c0_3 = arith.constant 0 : index
    %c0_4 = arith.constant 0 : index
    %4 = vector.load %arg3[%c0_3, %c0_4] : memref<1x128xf32, #tpu.memory_space<vmem>>, vector<1x128xf32>
    %5 = vector.broadcast %4 : vector<1x128xf32> to vector<16x128xf32>
    %6 = arith.addf %3, %5 : vector<16x128xf32>
    %cst_5 = arith.constant 0.000000e+00 : f32
    %7 = vector.broadcast %cst_5 : f32 to vector<16x128xf32>
    %8 = arith.maximumf %6, %7 : vector<16x128xf32>
    %9 = arith.truncf %8 : vector<16x128xf32> to vector<16x128xbf16>
    %c0_6 = arith.constant 0 : index
    %c0_7 = arith.constant 0 : index
    %10 = vector.load %arg4[%c0_6, %c0_7] : memref<128x128xbf16, #tpu.memory_space<vmem>>, vector<128x128xbf16>
    %cst_8 = arith.constant dense<0.000000e+00> : vector<16x128xf32>
    %11 = tpu.matmul %9, %10, %cst_8 {dimension_numbers = #tpu.dot_dimension_numbers<[1], [0], [0], [1], [0, 0, 1, 1], [], []>} : vector<16x128xbf16>, vector<128x128xbf16>, vector<16x128xf32> -> vector<16x128xf32>
    %c0_9 = arith.constant 0 : index
    %c0_10 = arith.constant 0 : index
    %12 = vector.load %arg5[%c0_9, %c0_10] : memref<1x128xf32, #tpu.memory_space<vmem>>, vector<1x128xf32>
    %13 = vector.broadcast %12 : vector<1x128xf32> to vector<16x128xf32>
    %14 = arith.addf %11, %13 : vector<16x128xf32>
    %cst_11 = arith.constant 0.000000e+00 : f32
    %15 = vector.broadcast %cst_11 : f32 to vector<16x128xf32>
    %16 = arith.maximumf %14, %15 : vector<16x128xf32>
    %17 = arith.truncf %16 : vector<16x128xf32> to vector<16x128xbf16>
    %c0_12 = arith.constant 0 : index
    %c0_13 = arith.constant 0 : index
    %18 = vector.load %arg6[%c0_12, %c0_13] : memref<128x128xbf16, #tpu.memory_space<vmem>>, vector<128x128xbf16>
    %cst_14 = arith.constant dense<0.000000e+00> : vector<16x128xf32>
    %19 = tpu.matmul %17, %18, %cst_14 {dimension_numbers = #tpu.dot_dimension_numbers<[1], [0], [0], [1], [0, 0, 1, 1], [], []>} : vector<16x128xbf16>, vector<128x128xbf16>, vector<16x128xf32> -> vector<16x128xf32>
    %c0_15 = arith.constant 0 : index
    %c0_16 = arith.constant 0 : index
    %20 = vector.load %arg7[%c0_15, %c0_16] : memref<1x128xf32, #tpu.memory_space<vmem>>, vector<1x128xf32>
    %21 = vector.broadcast %20 : vector<1x128xf32> to vector<16x128xf32>
    %22 = arith.addf %19, %21 : vector<16x128xf32>
    %23 = arith.truncf %22 : vector<16x128xf32> to vector<16x128xbf16>
    %c0_17 = arith.constant 0 : index
    %c0_18 = arith.constant 0 : index
    %24 = vector.load %arg8[%c0_17, %c0_18] : memref<16x128xbf16, #tpu.memory_space<vmem>>, vector<16x128xbf16>
    tpu.vector_store %arg8[%c0_17, %c0_18], %23 {strides = array<i32>} : memref<16x128xbf16, #tpu.memory_space<vmem>>, vector<16x128xbf16>,
    return
  }
  func.func @transform_0(%arg0: i32) -> (i32, i32) {
    %c0_i32 = arith.constant 0 : i32
    %c0_i32_0 = arith.constant 0 : i32
    return %arg0, %c0_i32 : i32, i32
  }
  func.func @transform_1(%arg0: i32) -> (i32, i32) {
    %c0_i32 = arith.constant 0 : i32
    %c0_i32_0 = arith.constant 0 : i32
    %c0_i32_1 = arith.constant 0 : i32
    return %c0_i32, %c0_i32_0 : i32, i32
  }
  func.func @transform_2(%arg0: i32) -> (i32, i32) {
    %c0_i32 = arith.constant 0 : i32
    %c0_i32_0 = arith.constant 0 : i32
    %c0_i32_1 = arith.constant 0 : i32
    return %c0_i32, %c0_i32_0 : i32, i32
  }
  func.func @transform_3(%arg0: i32) -> (i32, i32) {
    %c0_i32 = arith.constant 0 : i32
    %c0_i32_0 = arith.constant 0 : i32
    %c0_i32_1 = arith.constant 0 : i32
    return %c0_i32, %c0_i32_0 : i32, i32
  }
  func.func @transform_4(%arg0: i32) -> (i32, i32) {
    %c0_i32 = arith.constant 0 : i32
    %c0_i32_0 = arith.constant 0 : i32
    %c0_i32_1 = arith.constant 0 : i32
    return %c0_i32, %c0_i32_0 : i32, i32
  }
  func.func @transform_5(%arg0: i32) -> (i32, i32) {
    %c0_i32 = arith.constant 0 : i32
    %c0_i32_0 = arith.constant 0 : i32
    %c0_i32_1 = arith.constant 0 : i32
    return %c0_i32, %c0_i32_0 : i32, i32
  }
  func.func @transform_6(%arg0: i32) -> (i32, i32) {
    %c0_i32 = arith.constant 0 : i32
    %c0_i32_0 = arith.constant 0 : i32
    %c0_i32_1 = arith.constant 0 : i32
    return %c0_i32, %c0_i32_0 : i32, i32
  }
  func.func @transform_7(%arg0: i32) -> (i32, i32) {
    %c0_i32 = arith.constant 0 : i32
    %c0_i32_0 = arith.constant 0 : i32
    return %arg0, %c0_i32 : i32, i32
  }
}

</mosaic_0001>

<bundles_post_ra>
// kernel: policy_network_forward.1
= control target key start
LH: loop header
LB: loop body
LE: loop exit
PB: predicated region body
PF: predicated region fallthrough
CT: control target
= control target key end

     0   :  { %vm50_vm0 = vcmask 261120   ;;  %s457_s1 = inlined_call_operand.vmem [shape: bf16[32,128], index: 1, kind: input, shape index: {}]   ;;  %s458_s0 = inlined_call_operand.vmem [shape: f32[16,32], index: 0, kind: input, shape index: {}]   ;;  %s459_s3 = inlined_call_operand.vmem [shape: bf16[128,128], index: 3, kind: input, shape index: {}]   ;;  %s460_s2 = inlined_call_operand.vmem [shape: f32[1,128], index: 2, kind: input, shape index: {}]   ;;  %s461_s4 = inlined_call_operand.vmem [shape: f32[1,128], index: 4, kind: input, shape index: {}]   ;;  %s462_s5 = inlined_call_operand.vmem [shape: bf16[128,128], index: 5, kind: input, shape index: {}]   ;;  %s463_s6 = inlined_call_operand.vmem [shape: f32[1,128], index: 6, kind: input, shape index: {}]   ;;  %s464_s7 = inlined_call_operand.vmem [shape: bf16[16,128], index: 7, kind: output, shape index: {}]  }
   0x1   :  { %v320_v0 = vld [vmem:[%s457_s1 + $0x8] sm:$0xff]  ;;  %v319_v1 = vld [vmem:[%s457_s1] sm:$0xff]  ;;  %v328_v2 = vld [vmem:[%s459_s3 + $0x38] sm:$0xff] }
   0x2   :  { %60 = vmatpush.bf16.msra.mxu0 %v320_v0  ;;  %v27_v3 = vld [vmem:[%s458_s0] sm:$0xff]  ;;  %v28_v4 = vld [vmem:[%s458_s0 + $0x8] sm:$0xff]  ;;  %139 = vmatpush.bf16.msra.mxu1 %v328_v2  ;;  %v327_v5 = vld [vmem:[%s459_s3 + $0x30] sm:$0xff] }
   0x3   :  { %v29_v6 = vpack.c.bf16 %v28_v4, %v27_v3  ;;  %v326_v7 = vld [vmem:[%s459_s3 + $0x28] sm:$0xff]  ;;  %v325_v8 = vld [vmem:[%s459_s3 + $0x20] sm:$0xff]  ;;  %v324_v9 = vld [vmem:[%s459_s3 + $0x18] sm:$0xff] }
   0x4   :  { %v323_v10 = vld [vmem:[%s459_s3 + $0x10] sm:$0xff]  ;;  %v322_v11 = vld [vmem:[%s459_s3 + $0x8] sm:$0xff]  ;;  %v321_v12 = vld [vmem:[%s459_s3] sm:$0xff] }
   0x5   :  { %v336_v13 = vld [vmem:[%s462_s5 + $0x38] sm:$0xff]  ;;  %v335_v14 = vld [vmem:[%s462_s5 + $0x30] sm:$0xff]  ;;  %v334_v15 = vld [vmem:[%s462_s5 + $0x28] sm:$0xff] }
   0x6   :  { %61 = vmatpush.bf16.msra.mxu0 %v319_v1  ;;  %140 = vmatpush.bf16.msra.mxu1 %v327_v5  ;;  %v333_v16 = vld [vmem:[%s462_s5 + $0x20] sm:$0xff]  ;;  %v332_v25 = vld [vmem:[%s462_s5 + $0x18] sm:$0xff]  ;;  %v331_v26 = vld [vmem:[%s462_s5 + $0x10] sm:$0xff] }
   0x7   :  { %224 = vmatpush.bf16.msra.mxu2 %v336_v13  ;;  %v342_v18 = vld [vmem:[%s460_s2] ss:$0 sm:$0xff]  ;;  %v330_v27 = vld [vmem:[%s462_s5 + $0x8] sm:$0xff] }
   0x8   :  { %v329_v28 = vld [vmem:[%s462_s5] sm:$0xff] }
   0x9   :  { %254 = vmatmul.msk.bf16.vlgmr.msra.gmra.mxu0 %vm50_vm0, %v29_v6  ;;  %v343_v30 = vld [vmem:[%s461_s4] ss:$0 sm:$0xff] }
   0xa   :  { %141 = vmatpush.bf16.msra.mxu1 %v326_v7  ;;  %v344_v38 = vld [vmem:[%s463_s6] ss:$0 sm:$0xff] }
   0xb   :  { %225 = vmatpush.bf16.msra.mxu2 %v335_v14 }
   0xe   :  { %142 = vmatpush.bf16.msra.mxu1 %v325_v8 }
   0xf   :  { %226 = vmatpush.bf16.msra.mxu2 %v334_v15 }
  0x12   :  { %143 = vmatpush.bf16.msra.mxu1 %v324_v9 }
  0x13   :  { %227 = vmatpush.bf16.msra.mxu2 %v333_v16 }
  0x16   :  { %144 = vmatpush.bf16.msra.mxu1 %v323_v10 }
  0x17   :  { %228 = vmatpush.bf16.msra.mxu2 %v332_v25 }
  0x1a   :  { %145 = vmatpush.bf16.msra.mxu1 %v322_v11 }
  0x1b   :  { %229 = vmatpush.bf16.msra.mxu2 %v331_v26 }
  0x1e   :  { %146 = vmatpush.bf16.msra.mxu1 %v321_v12 }
  0x1f   :  { %230 = vmatpush.bf16.msra.mxu2 %v330_v27 }
  0x23   :  { %231 = vmatpush.bf16.msra.mxu2 %v329_v28 }
  0x86   :  { %v63_v17 = vpop.f32.mrf.mxu0 }
  0x87   :  { %v64_v19 = vadd.f32 %v342_v18, %v63_v17 }
  0x89   :  { %v68_v22 = vmax.f32 %v64_v19, 0.0 }
  0x8e   :  { %v65_v20 = vpop.f32.mrf.mxu0 }
  0x8f   :  { %v66_v21 = vadd.f32 %v342_v18, %v65_v20 }
  0x91   :  { %v69_v23 = vmax.f32 %v66_v21, 0.0 }
  0x93   :  { %v70_v24 = vpack.c.bf16 %v69_v23, %v68_v22 }
  0x95   :  { %147 = vmatmul.bf16.vlgmr.msra.gmra.mxu1 %v70_v24 }
 0x112   :  { %v148_v29 = vpop.f32.mrf.mxu1 }
 0x113   :  { %v149_v31 = vadd.f32 %v343_v30, %v148_v29 }
 0x115   :  { %v153_v34 = vmax.f32 %v149_v31, 0.0 }
 0x11a   :  { %v150_v32 = vpop.f32.mrf.mxu1 }
 0x11b   :  { %v151_v33 = vadd.f32 %v343_v30, %v150_v32 }
 0x11d   :  { %v154_v35 = vmax.f32 %v151_v33, 0.0 }
 0x11f   :  { %v155_v36 = vpack.c.bf16 %v154_v35, %v153_v34 }
 0x121   :  { %232 = vmatmul.bf16.vlgmr.msra.gmra.mxu2 %v155_v36 }
 0x1a4   :  { %v233_v37 = vpop.f32.mrf.mxu2 }
 0x1a5   :  { %v234_v40 = vadd.f32 %v344_v38, %v233_v37 }
 0x1ac   :  { %v235_v39 = vpop.f32.mrf.mxu2 }
 0x1ad   :  { %v236_v41 = vadd.f32 %v344_v38, %v235_v39 }
 0x1af   :  { %v340_v42 = vpack.c.bf16 %v236_v41, %v234_v40 }
 0x1b1   :  { %341 = vst [vmem:[%s464_s7] sm:$0xff] %v340_v42  }

</bundles_post_ra>
